<compile_context>
chip_gen: v5e
topology: v5e:2x2
jax: 0.10.0
libtpu: 0.0.40
codegen_flags: <defaults>
</compile_context>

<pallas_src>
import jax
import jax.numpy as jnp
from jax.experimental import pallas as pl
from jax.experimental.pallas import tpu as pltpu

LANE = 128                      # hidden dims padded to lane-dense vregs
BATCH_ALIGN = 16                # sublane alignment (covers bf16 row packing)
TB_MAX = 4096                   # batch-tile cap (further limited by VMEM math)
VMEM_BUDGET = 24 * 1024 * 1024  # headroom under the 32 MiB scoped VMEM limit


def _round_up(n: int, m: int) -> int:
    return ((n + m - 1) // m) * m


def _num_tensorcores() -> int:
    """Best-effort TensorCore count of device 0 (v7x = 2 TCs/chip)."""
    try:
        kind = jax.devices()[0].device_kind.lower()
    except Exception:
        return 1
    return 2 if ("v7" in kind or "tpu7" in kind) else 1


def _pick_tb(batch: int, in_dim: int, out_dim: int, hid_p: int, num_tc: int) -> int:
    """Batch tile: as big as the VMEM budget allows, split so every TC gets at
    least one grid step, and sized to minimise last-tile padding waste."""
    def tile_bytes(tb):
        io = 2 * tb * in_dim * 4 + 2 * tb * out_dim * 4   # double-buffered x / out
        act = 4 * tb * hid_p * 4                          # f32 + bf16 hidden intermediates
        return io + act

    tb_cap = TB_MAX
    while tb_cap > BATCH_ALIGN and tile_bytes(tb_cap) > VMEM_BUDGET:
        tb_cap //= 2

    n_steps = max(num_tc, pl.cdiv(batch, tb_cap))
    tb = _round_up(pl.cdiv(batch, n_steps), BATCH_ALIGN)
    return max(min(tb, tb_cap), BATCH_ALIGN)


def _mlp_kernel(x_ref, w1_ref, b1_ref, w2_ref, b2_ref, w3_ref, b3_ref, o_ref):
    # x streams in as f32 and is cast to the weight dtype (bf16 by default)
    # in-kernel; matmuls run on the MXU with f32 accumulation; bias add / relu
    # stay f32 (v5e's VPU has no bf16 ALU).
    mm_dtype = w1_ref.dtype
    x = x_ref[...].astype(mm_dtype)

    h = jnp.dot(x, w1_ref[...], preferred_element_type=jnp.float32)
    h = jnp.maximum(h + b1_ref[...], 0.0)                  # relu (hidden layer 1)

    h = jnp.dot(h.astype(mm_dtype), w2_ref[...],
                preferred_element_type=jnp.float32)
    h = jnp.maximum(h + b2_ref[...], 0.0)                  # relu (hidden layer 2)

    out = jnp.dot(h.astype(mm_dtype), w3_ref[...],
                  preferred_element_type=jnp.float32)
    o_ref[...] = (out + b3_ref[...]).astype(o_ref.dtype)   # no output activation


def prepare_params(w1, b1, w2, b2, w3, b3, param_dtype=jnp.bfloat16):
    """One-time parameter prep (hoisted out of the per-call forward).

    Hidden dims are zero-padded to a 128-lane multiple (padding is
    semantics-preserving: padded bias lanes are 0, relu(0)=0, padded w3 rows
    are 0).  The output dim is left UNPADDED so the kernel writes only real
    output lanes.  Weights are cast to `param_dtype` (use jnp.float32 here if
    exact f32 nn.Linear parity is required; the kernel is DMA-bound so the
    MXU precision choice costs little)."""
    in_dim, hid = w1.shape
    out_dim = w3.shape[1]
    hid_p = _round_up(hid, LANE)

    w1p = jnp.zeros((in_dim, hid_p), param_dtype).at[:, :hid].set(w1.astype(param_dtype))
    w2p = jnp.zeros((hid_p, hid_p), param_dtype).at[:hid, :hid].set(w2.astype(param_dtype))
    w3p = jnp.zeros((hid_p, out_dim), param_dtype).at[:hid, :].set(w3.astype(param_dtype))
    b1p = jnp.zeros((1, hid_p), jnp.float32).at[:, :hid].set(b1.reshape(1, -1))
    b2p = jnp.zeros((1, hid_p), jnp.float32).at[:, :hid].set(b2.reshape(1, -1))
    b3p = b3.reshape(1, out_dim).astype(jnp.float32)
    return w1p, b1p, w2p, b2p, w3p, b3p


@jax.jit
def mlp_forward(x, w1p, b1p, w2p, b2p, w3p, b3p):
    """x: (B, input_dim) f32.  Prepared params from prepare_params().
    Returns (B, output_dim) f32."""
    B, in_dim = x.shape
    hid_p = w1p.shape[1]
    out_dim = w3p.shape[1]

    tb = _pick_tb(B, in_dim, out_dim, hid_p, _num_tensorcores())
    grid = (pl.cdiv(B, tb),)   # partial last tile: boundary DMA clamped, OOB writes dropped

    resident = lambda shape: pl.BlockSpec(shape, lambda i: (0,) * len(shape))

    return pl.pallas_call(
        _mlp_kernel,
        out_shape=jax.ShapeDtypeStruct((B, out_dim), jnp.float32),
        grid=grid,
        in_specs=[
            pl.BlockSpec((tb, in_dim), lambda i: (i, 0)),      # batch-streamed x (f32)
            resident((in_dim, hid_p)), resident((1, hid_p)),   # layer 1 (VMEM-resident)
            resident((hid_p, hid_p)), resident((1, hid_p)),    # layer 2
            resident((hid_p, out_dim)), resident((1, out_dim)),# layer 3 (lane-unpadded N)
        ],
        out_specs=pl.BlockSpec((tb, out_dim), lambda i: (i, 0)),
        compiler_params=pltpu.CompilerParams(
            dimension_semantics=("parallel",),   # shards batch steps across v7x's 2 TCs
            vmem_limit_bytes=32 * 1024 * 1024,
        ),
    )(x, w1p, b1p, w2p, b2p, w3p, b3p)


def init_linear(key, fan_in, fan_out):
    """Mimics nn.Linear's U(-1/sqrt(fan_in), 1/sqrt(fan_in)) init.
    Weight returned as (fan_in, fan_out) for x @ W; bias as (fan_out,)."""
    kw, kb = jax.random.split(key)
    bound = 1.0 / jnp.sqrt(float(fan_in))
    w = jax.random.uniform(kw, (fan_in, fan_out), jnp.float32, -bound, bound)
    b = jax.random.uniform(kb, (fan_out,), jnp.float32, -bound, bound)
    return w, b


if __name__ == "__main__":
    # Module defaults: hidden_dim=20, hidden_layers=1, relu hidden, no output act.
    input_dim, hidden_dim, output_dim = 16, 20, 8
    batch = 4

    key = jax.random.PRNGKey(0)
    kx, k1, k2, k3 = jax.random.split(key, 4)

    x = jax.random.normal(kx, (batch, input_dim), jnp.float32)
    w1, b1 = init_linear(k1, input_dim, hidden_dim)
    w2, b2 = init_linear(k2, hidden_dim, hidden_dim)
    w3, b3 = init_linear(k3, hidden_dim, output_dim)

    params = prepare_params(w1, b1, w2, b2, w3, b3)     # one-time setup
    out = mlp_forward(x, *params)
    jax.block_until_ready(out)
    assert out.shape == (batch, output_dim)

    # Reference matching the kernel's bf16-operand / f32-accumulate matmuls.
    bf16 = jnp.bfloat16
    ref = jnp.maximum(jnp.dot(x.astype(bf16), w1.astype(bf16),
                              preferred_element_type=jnp.float32) + b1, 0.0)
    ref = jnp.maximum(jnp.dot(ref.astype(bf16), w2.astype(bf16),
                              preferred_element_type=jnp.float32) + b2, 0.0)
    ref = jnp.dot(ref.astype(bf16), w3.astype(bf16),
                  preferred_element_type=jnp.float32) + b3
    assert jnp.allclose(out, ref, atol=1e-3, rtol=1e-3), "mismatch vs bf16 reference"

    # Loose check against the pure-f32 PyTorch-equivalent forward.
    ref32 = jnp.maximum(x @ w1 + b1, 0.0)
    ref32 = jnp.maximum(ref32 @ w2 + b2, 0.0)
    ref32 = ref32 @ w3 + b3
    assert jnp.allclose(out, ref32, atol=5e-2, rtol=5e-2), "mismatch vs f32 reference"

    print("KERNEL_OK")
</pallas_src>

<mosaic_0001>
module attributes {stable_mosaic.version = 11 : i64} {
  func.func @_mlp_kernel(%arg0: i32, %arg1: memref<16x16xf32, #tpu.memory_space<vmem>>, %arg2: memref<16x128xbf16, #tpu.memory_space<vmem>>, %arg3: memref<1x128xf32, #tpu.memory_space<vmem>>, %arg4: memref<128x128xbf16, #tpu.memory_space<vmem>>, %arg5: memref<1x128xf32, #tpu.memory_space<vmem>>, %arg6: memref<128x8xbf16, #tpu.memory_space<vmem>>, %arg7: memref<1x8xf32, #tpu.memory_space<vmem>>, %arg8: memref<16x8xf32, #tpu.memory_space<vmem>>) attributes {dimension_semantics = [#tpu.dimension_semantics<parallel>], iteration_bounds = array<i64: 1>, scalar_prefetch = 0 : i64, scratch_operands = 0 : i64, tpu.core_type = #tpu.core_type<tc>, window_params = [{transform_indices = @transform_0, window_bounds = array<i64: 16, 16>}, {pipeline_mode = #tpu.pipeline_mode<synchronous>, transform_indices = @transform_1, window_bounds = array<i64: 16, 128>}, {pipeline_mode = #tpu.pipeline_mode<synchronous>, transform_indices = @transform_2, window_bounds = array<i64: 1, 128>}, {pipeline_mode = #tpu.pipeline_mode<synchronous>, transform_indices = @transform_3, window_bounds = array<i64: 128, 128>}, {pipeline_mode = #tpu.pipeline_mode<synchronous>, transform_indices = @transform_4, window_bounds = array<i64: 1, 128>}, {pipeline_mode = #tpu.pipeline_mode<synchronous>, transform_indices = @transform_5, window_bounds = array<i64: 128, 8>}, {pipeline_mode = #tpu.pipeline_mode<synchronous>, transform_indices = @transform_6, window_bounds = array<i64: 1, 8>}, {transform_indices = @transform_7, window_bounds = array<i64: 16, 8>}]} {
    %c0 = arith.constant 0 : index
    %c0_0 = arith.constant 0 : index
    %0 = vector.load %arg1[%c0, %c0_0] : memref<16x16xf32, #tpu.memory_space<vmem>>, vector<16x16xf32>
    %1 = arith.truncf %0 : vector<16x16xf32> to vector<16x16xbf16>
    %c0_1 = arith.constant 0 : index
    %c0_2 = arith.constant 0 : index
    %2 = vector.load %arg2[%c0_1, %c0_2] : memref<16x128xbf16, #tpu.memory_space<vmem>>, vector<16x128xbf16>
    %cst = arith.constant dense<0.000000e+00> : vector<16x128xf32>
    %3 = tpu.matmul %1, %2, %cst {dimension_numbers = #tpu.dot_dimension_numbers<[1], [0], [0], [1], [0, 0, 1, 1], [], []>} : vector<16x16xbf16>, vector<16x128xbf16>, vector<16x128xf32> -> vector<16x128xf32>
    %c0_3 = arith.constant 0 : index
    %c0_4 = arith.constant 0 : index
    %4 = vector.load %arg3[%c0_3, %c0_4] : memref<1x128xf32, #tpu.memory_space<vmem>>, vector<1x128xf32>
    %5 = vector.broadcast %4 : vector<1x128xf32> to vector<16x128xf32>
    %6 = arith.addf %3, %5 : vector<16x128xf32>
    %cst_5 = arith.constant 0.000000e+00 : f32
    %7 = vector.broadcast %cst_5 : f32 to vector<16x128xf32>
    %8 = arith.maximumf %6, %7 : vector<16x128xf32>
    %9 = arith.truncf %8 : vector<16x128xf32> to vector<16x128xbf16>
    %c0_6 = arith.constant 0 : index
    %c0_7 = arith.constant 0 : index
    %10 = vector.load %arg4[%c0_6, %c0_7] : memref<128x128xbf16, #tpu.memory_space<vmem>>, vector<128x128xbf16>
    %cst_8 = arith.constant dense<0.000000e+00> : vector<16x128xf32>
    %11 = tpu.matmul %9, %10, %cst_8 {dimension_numbers = #tpu.dot_dimension_numbers<[1], [0], [0], [1], [0, 0, 1, 1], [], []>} : vector<16x128xbf16>, vector<128x128xbf16>, vector<16x128xf32> -> vector<16x128xf32>
    %c0_9 = arith.constant 0 : index
    %c0_10 = arith.constant 0 : index
    %12 = vector.load %arg5[%c0_9, %c0_10] : memref<1x128xf32, #tpu.memory_space<vmem>>, vector<1x128xf32>
    %13 = vector.broadcast %12 : vector<1x128xf32> to vector<16x128xf32>
    %14 = arith.addf %11, %13 : vector<16x128xf32>
    %cst_11 = arith.constant 0.000000e+00 : f32
    %15 = vector.broadcast %cst_11 : f32 to vector<16x128xf32>
    %16 = arith.maximumf %14, %15 : vector<16x128xf32>
    %17 = arith.truncf %16 : vector<16x128xf32> to vector<16x128xbf16>
    %c0_12 = arith.constant 0 : index
    %c0_13 = arith.constant 0 : index
    %18 = vector.load %arg6[%c0_12, %c0_13] : memref<128x8xbf16, #tpu.memory_space<vmem>>, vector<128x8xbf16>
    %cst_14 = arith.constant dense<0.000000e+00> : vector<16x8xf32>
    %19 = tpu.matmul %17, %18, %cst_14 {dimension_numbers = #tpu.dot_dimension_numbers<[1], [0], [0], [1], [0, 0, 1, 1], [], []>} : vector<16x128xbf16>, vector<128x8xbf16>, vector<16x8xf32> -> vector<16x8xf32>
    %c0_15 = arith.constant 0 : index
    %c0_16 = arith.constant 0 : index
    %20 = vector.load %arg7[%c0_15, %c0_16] : memref<1x8xf32, #tpu.memory_space<vmem>>, vector<1x8xf32>
    %21 = vector.broadcast %20 : vector<1x8xf32> to vector<16x8xf32>
    %22 = arith.addf %19, %21 : vector<16x8xf32>
    %c0_17 = arith.constant 0 : index
    %c0_18 = arith.constant 0 : index
    %23 = vector.load %arg8[%c0_17, %c0_18] : memref<16x8xf32, #tpu.memory_space<vmem>>, vector<16x8xf32>
    tpu.vector_store %arg8[%c0_17, %c0_18], %22 {strides = array<i32>} : memref<16x8xf32, #tpu.memory_space<vmem>>, vector<16x8xf32>,
    return
  }
  func.func @transform_0(%arg0: i32) -> (i32, i32) {
    %c0_i32 = arith.constant 0 : i32
    %c0_i32_0 = arith.constant 0 : i32
    return %arg0, %c0_i32 : i32, i32
  }
  func.func @transform_1(%arg0: i32) -> (i32, i32) {
    %c0_i32 = arith.constant 0 : i32
    %c0_i32_0 = arith.constant 0 : i32
    %c0_i32_1 = arith.constant 0 : i32
    return %c0_i32, %c0_i32_0 : i32, i32
  }
  func.func @transform_2(%arg0: i32) -> (i32, i32) {
    %c0_i32 = arith.constant 0 : i32
    %c0_i32_0 = arith.constant 0 : i32
    %c0_i32_1 = arith.constant 0 : i32
    return %c0_i32, %c0_i32_0 : i32, i32
  }
  func.func @transform_3(%arg0: i32) -> (i32, i32) {
    %c0_i32 = arith.constant 0 : i32
    %c0_i32_0 = arith.constant 0 : i32
    %c0_i32_1 = arith.constant 0 : i32
    return %c0_i32, %c0_i32_0 : i32, i32
  }
  func.func @transform_4(%arg0: i32) -> (i32, i32) {
    %c0_i32 = arith.constant 0 : i32
    %c0_i32_0 = arith.constant 0 : i32
    %c0_i32_1 = arith.constant 0 : i32
    return %c0_i32, %c0_i32_0 : i32, i32
  }
  func.func @transform_5(%arg0: i32) -> (i32, i32) {
    %c0_i32 = arith.constant 0 : i32
    %c0_i32_0 = arith.constant 0 : i32
    %c0_i32_1 = arith.constant 0 : i32
    return %c0_i32, %c0_i32_0 : i32, i32
  }
  func.func @transform_6(%arg0: i32) -> (i32, i32) {
    %c0_i32 = arith.constant 0 : i32
    %c0_i32_0 = arith.constant 0 : i32
    %c0_i32_1 = arith.constant 0 : i32
    return %c0_i32, %c0_i32_0 : i32, i32
  }
  func.func @transform_7(%arg0: i32) -> (i32, i32) {
    %c0_i32 = arith.constant 0 : i32
    %c0_i32_0 = arith.constant 0 : i32
    return %arg0, %c0_i32 : i32, i32
  }
}

</mosaic_0001>

<bundles_post_ra>
// kernel: mlp_forward.1
= control target key start
LH: loop header
LB: loop body
LE: loop exit
PB: predicated region body
PF: predicated region fallthrough
CT: control target
= control target key end

     0   :  { %12 = vsyncpa [#allocation3], 0  ;;  %s615_s0 = inlined_call_operand.vmem [shape: f32[4,16], index: 0, kind: input, shape index: {}]   ;;  %s616_s1 = inlined_call_operand.hbm [shape: bf16[16,128], index: 1, kind: input, shape index: {}]   ;;  %s617_s2 = inlined_call_operand.hbm [shape: f32[1,128], index: 2, kind: input, shape index: {}]   ;;  %s618_s3 = inlined_call_operand.vmem [shape: bf16[128,128], index: 3, kind: input, shape index: {}]   ;;  %s619_s4 = inlined_call_operand.hbm [shape: f32[1,128], index: 4, kind: input, shape index: {}]   ;;  %s620_s5 = inlined_call_operand.vmem [shape: bf16[128,8], index: 5, kind: input, shape index: {}]   ;;  %s621_s6 = inlined_call_operand.vmem [shape: f32[1,8], index: 6, kind: input, shape index: {}]   ;;  %s622_s7 = inlined_call_operand.hbm [shape: f32[4,8], index: 7, kind: output, shape index: {}]  }
   0x1   :  { %13 = vsyncpa [#allocation6], 0  ;;  %s35_s26 = sshll.u32 %s617_s2, 4  ;;  %s36_s26 = int_to_ptr.hbm [resolvable:$true] %s35_s26 }
   0x2   :  { %14 = vsyncpa [#allocation4], 0  ;;  %s494_s27 = smov [#allocation5]   ;;  %s21_s8 = sshll.u32 %s616_s1, 4  ;;  %s22_s8 = int_to_ptr.hbm [resolvable:$true] %s21_s8 }
   0x3   :  { %s37_s28 = sshll.u32 %s494_s27, 4  ;;  %s495_s9 = smov [#allocation2]   ;;  %s38_s28 = int_to_ptr.vmem [resolvable:$true] %s37_s28 }
   0x4   :  { %40 = dma.hbm_to_vmem [thread:$0]  %s36_s26, 16, %s38_s28, [#allocation6]  }
   0x5   :  { %s23_s10 = sshll.u32 %s495_s9, 4  ;;  %s496_s11 = smov 64   ;;  %s24_s10 = int_to_ptr.vmem [resolvable:$true] %s23_s10 }
   0x6   :  { %s497_s12 = smov 4   ;;  %s48_s14 = sshll.u32 %s619_s4, 4  ;;  %s49_s14 = int_to_ptr.hbm [resolvable:$true] %s48_s14 }
   0x7   :  { %29 = dma.hbm_to_vmem [thread:$0]  %s22_s8, 128, %s24_s10, [#allocation3], %s496_s11, %s496_s11, %s497_s12  }
   0x8   :  { %s498_s15 = smov [#allocation7]  }
   0x9   :  { %s50_s16 = sshll.u32 %s498_s15, 4  ;;  %s51_s16 = int_to_ptr.vmem [resolvable:$true] %s50_s16 }
   0xa   :  { %53 = dma.hbm_to_vmem [thread:$0]  %s49_s14, 16, %s51_s16, [#allocation6]  }
   0xb   :  { %488 = dma.done.wait [#allocation3], 128  }
   0xc   :  { %489 = vsyncadd [#allocation3], 4294967168 }
   0xd   :  { %490 = dma.done.wait [#allocation6], 32  }
   0xe   :  { %491 = vsyncadd [#allocation6], 4294967264  ;;  %v366_v0 = vld [vmem:[#allocation2] sm:$0xff]  ;;  %v72_v2 = vld [vmem:[%s615_s0 + $0x8] sm:$0xff]  ;;  %vm86_vm0 = vcmask 130048   ;;  %vm274_vm1 = vcmask 64512  }
   0xf   :  { %v71_v1 = vld [vmem:[%s615_s0] sm:$0xff]  ;;  %v374_v4 = vld [vmem:[%s618_s3 + $0x38] sm:$0xff]  ;;  %97 = vmatpush.bf16.msra.mxu0 %v366_v0  ;;  %v373_v5 = vld [vmem:[%s618_s3 + $0x30] sm:$0xff] }
  0x10   :  { %v73_v3 = vpack.c.bf16 %v72_v2, %v71_v1  ;;  %175 = vmatpush.bf16.msra.mxu1 %v374_v4  ;;  %v372_v6 = vld [vmem:[%s618_s3 + $0x28] sm:$0xff]  ;;  %v371_v7 = vld [vmem:[%s618_s3 + $0x20] sm:$0xff]  ;;  %v370_v8 = vld [vmem:[%s618_s3 + $0x18] sm:$0xff] }
  0x11   :  { %v369_v9 = vld [vmem:[%s618_s3 + $0x10] sm:$0xff]  ;;  %v368_v10 = vld [vmem:[%s618_s3 + $0x8] sm:$0xff]  ;;  %v367_v11 = vld [vmem:[%s618_s3] sm:$0xff] }
  0x12   :  { %301 = vmatmul.msk.bf16.vlgmr.msra.gmra.mxu0 %vm86_vm0, %v73_v3  ;;  %v382_v12 = vld [vmem:[%s620_s5 + $0x38] sm:$0xff]  ;;  %v381_v13 = vld [vmem:[%s620_s5 + $0x30] sm:$0xff]  ;;  %v380_v14 = vld [vmem:[%s620_s5 + $0x28] sm:$0xff] }
  0x13   :  { %260 = vmatpush.bf16.msra.mxu2 %v382_v12  ;;  %v379_v15 = vld [vmem:[%s620_s5 + $0x20] sm:$0xff]  ;;  %v389_v17 = vld [vmem:[#allocation5] ss:$0 sm:$0xff]  ;;  %v378_v24 = vld [vmem:[%s620_s5 + $0x18] sm:$0xff] }
  0x14   :  { %176 = vmatpush.bf16.msra.mxu1 %v373_v5  ;;  %v377_v25 = vld [vmem:[%s620_s5 + $0x10] sm:$0xff]  ;;  %v376_v26 = vld [vmem:[%s620_s5 + $0x8] sm:$0xff]  ;;  %v375_v27 = vld [vmem:[%s620_s5] sm:$0xff] }
  0x15   :  { %v390_v29 = vld [vmem:[#allocation7] ss:$0 sm:$0xff]  ;;  %v391_v36 = vld [vmem:[%s621_s6] ss:$0 sm:$0xff] }
  0x17   :  { %261 = vmatpush.bf16.msra.mxu2 %v381_v13 }
  0x18   :  { %177 = vmatpush.bf16.msra.mxu1 %v372_v6 }
  0x1b   :  { %262 = vmatpush.bf16.msra.mxu2 %v380_v14 }
  0x1c   :  { %178 = vmatpush.bf16.msra.mxu1 %v371_v7 }
  0x1f   :  { %263 = vmatpush.bf16.msra.mxu2 %v379_v15 }
  0x20   :  { %179 = vmatpush.bf16.msra.mxu1 %v370_v8 }
  0x23   :  { %264 = vmatpush.bf16.msra.mxu2 %v378_v24 }
  0x24   :  { %180 = vmatpush.bf16.msra.mxu1 %v369_v9 }
  0x27   :  { %265 = vmatpush.bf16.msra.mxu2 %v377_v25 }
  0x28   :  { %181 = vmatpush.bf16.msra.mxu1 %v368_v10 }
  0x2b   :  { %266 = vmatpush.bf16.msra.mxu2 %v376_v26 }
  0x2c   :  { %182 = vmatpush.bf16.msra.mxu1 %v367_v11 }
  0x2f   :  { %267 = vmatpush.bf16.msra.mxu2 %v375_v27 }
  0x8f   :  { %v99_v16 = vpop.f32.mrf.mxu0 }
  0x90   :  { %v100_v18 = vadd.f32 %v389_v17, %v99_v16 }
  0x92   :  { %v104_v21 = vmax.f32 %v100_v18, 0.0 }
  0x97   :  { %v101_v19 = vpop.f32.mrf.mxu0 }
  0x98   :  { %v102_v20 = vadd.f32 %v389_v17, %v101_v19 }
  0x9a   :  { %v105_v22 = vmax.f32 %v102_v20, 0.0 }
  0x9c   :  { %v106_v23 = vpack.c.bf16 %v105_v22, %v104_v21 }
  0x9e   :  { %183 = vmatmul.bf16.vlgmr.msra.gmra.mxu1 %v106_v23 }
 0x11b   :  { %v184_v28 = vpop.f32.mrf.mxu1 }
 0x11c   :  { %v185_v30 = vadd.f32 %v390_v29, %v184_v28 }
 0x11e   :  { %v189_v33 = vmax.f32 %v185_v30, 0.0 }
 0x123   :  { %v186_v31 = vpop.f32.mrf.mxu1 }
 0x124   :  { %v187_v32 = vadd.f32 %v390_v29, %v186_v31 }
 0x126   :  { %v190_v34 = vmax.f32 %v187_v32, 0.0 }
 0x128   :  { %v191_v35 = vpack.c.bf16 %v190_v34, %v189_v33 }
 0x12a   :  { %268 = vmatmul.bf16.vlgmr.msra.gmra.mxu2 %v191_v35 }
 0x1ad   :  { %v269_v37 = vpop.f32.mrf.mxu2 }
 0x1ae   :  { %v270_v38 = vadd.f32 %v391_v36, %v269_v37 }
 0x1b0   :  { %275 = vst.msk [vmem:[#allocation8] sm:$0xff] %vm274_vm1, %v270_v38 }
 0x1b5   :  { %v271_v39 = vpop.f32.mrf.mxu2 }
 0x1b6   :  { %v272_v40 = vadd.f32 %v391_v36, %v271_v39 }
 0x1b8   :  { %276 = vst.msk [vmem:[#allocation8 + $0x8] sm:$0xff] %vm274_vm1, %v272_v40 }
 0x1b9   :  { %280 = vsyncadd [#allocation4], 192  ;;  %s283_s27 = sshll.u32 %s622_s7, 4  ;;  %s499_s28 = smov [#allocation8]   ;;  %s284_s27 = int_to_ptr.hbm [resolvable:$true] %s283_s27 }
 0x1ba   :  { %s281_s29 = sshll.u32 %s499_s28, 4  ;;  %s282_s29 = int_to_ptr.vmem [resolvable:$true] %s281_s29 }
 0x1bb   :  { %289 = dma.vmem_to_hbm [thread:$0]  %s282_s29, 64, %s284_s27, [#allocation4], %s496_s11, %s496_s11, %s497_s12  }
 0x1bc   :  { %492 = dma.done.wait [#allocation4], 256  }
 0x1bd   :  { %493 = vsyncadd [#allocation4], 4294967040 }
 0x1be   :  { %294 = vsyncpa [#allocation3], 1 }
 0x1bf   :  { %295 = vsyncpa [#allocation6], 1 }
 0x1c0   :  { %296 = vsyncpa [#allocation4], 1 }

</bundles_post_ra>
